<compile_context>
chip_gen: v5e
topology: v5e:2x2
jax: 0.10.0
libtpu: 0.0.40
codegen_flags: <defaults>
</compile_context>

<pallas_src>
import jax
import jax.numpy as jnp
from jax.experimental import pallas as pl
from jax.experimental.pallas import tpu as pltpu


def _round_up(x, m):
    return ((x + m - 1) // m) * m


def item_tower_kernel(item_ref, cat_ref, w1i_ref, w1c_ref, b1_ref, w2_ref,
                      b2_ref, o_ref):
    # item_ref/cat_ref: (TM, E)      activation row-tiles (f32 or bf16)
    # w1i_ref/w1c_ref:  (E, H_pad)   fc1 weight split (item / category halves)
    # b1_ref/b2_ref:    (1, H_pad)   f32 biases (epilogue stays f32)
    # w2_ref:           (H_pad, H_pad)
    # o_ref:            (TM, H_pad)  f32, lane-dense
    #
    # fc1 as split-K matmul (replaces the HBM concat of the two embedding
    # streams), f32 accumulation on the MXU.
    x = jnp.dot(item_ref[...], w1i_ref[...], preferred_element_type=jnp.float32)
    x = x + jnp.dot(cat_ref[...], w1c_ref[...], preferred_element_type=jnp.float32)
    h = jnp.tanh(x + b1_ref[...])                      # f32 bias + EUP tanh
    # fc2
    y = jnp.dot(h.astype(w2_ref.dtype), w2_ref[...],
                preferred_element_type=jnp.float32)
    o_ref[...] = jnp.tanh(y + b2_ref[...]).astype(o_ref.dtype)


def item_tower_forward(item_ids, category_ids, params, *, use_bf16=True,
                       row_tile=512):
    """Mirrors ItemTower.forward for (B, S) int id inputs."""
    # --- glue: normalize id ranks like the torch code ---------------------
    while item_ids.ndim > 2:
        item_ids = jnp.squeeze(item_ids, axis=1)
    while category_ids.ndim > 2:
        category_ids = jnp.squeeze(category_ids, axis=1)
    if item_ids.ndim == 1:
        item_ids = item_ids[:, None]
    if category_ids.ndim == 1:
        category_ids = category_ids[:, None]

    batch_size, seq_len = item_ids.shape
    n = batch_size * seq_len

    emb_dim = params["item_emb"].shape[1]
    hidden_dim = params["w2"].shape[1]
    h_pad = _round_up(hidden_dim, 128)            # lane-dense output width

    compute_dtype = jnp.bfloat16 if use_bf16 else jnp.float32

    # --- glue: embedding gathers (two separate slabs, no concat round-trip)
    item_emb = jnp.take(params["item_emb"], item_ids.reshape(-1), axis=0)
    cat_emb = jnp.take(params["cat_emb"], category_ids.reshape(-1), axis=0)
    item_emb = item_emb.astype(compute_dtype)
    cat_emb = cat_emb.astype(compute_dtype)

    # --- weights: split fc1 by input half, zero-pad hidden dim to h_pad ----
    w1 = params["w1"].astype(compute_dtype)
    w1_item = jnp.pad(w1[:emb_dim], ((0, 0), (0, h_pad - hidden_dim)))
    w1_cat = jnp.pad(w1[emb_dim:], ((0, 0), (0, h_pad - hidden_dim)))
    b1 = jnp.pad(params["b1"].astype(jnp.float32),
                 ((0, 0), (0, h_pad - hidden_dim)))
    w2 = jnp.pad(params["w2"].astype(compute_dtype),
                 ((0, h_pad - hidden_dim), (0, h_pad - hidden_dim)))
    b2 = jnp.pad(params["b2"].astype(jnp.float32),
                 ((0, 0), (0, h_pad - hidden_dim)))

    # --- row tiling: pad N so every block is full (padded rows sliced off) -
    n_aligned = _round_up(max(n, 8), 8)
    tm = min(row_tile, n_aligned)
    n_pad = _round_up(n_aligned, tm)
    if n_pad != n:
        item_emb = jnp.pad(item_emb, ((0, n_pad - n), (0, 0)))
        cat_emb = jnp.pad(cat_emb, ((0, n_pad - n), (0, 0)))

    grid = (n_pad // tm,)

    itemsize = jnp.dtype(compute_dtype).itemsize
    bytes_acts = (item_emb.size + cat_emb.size) * itemsize
    bytes_weights = sum(int(a.size) * jnp.dtype(a.dtype).itemsize
                        for a in (w1_item, w1_cat, b1, w2, b2))
    bytes_out = n_pad * h_pad * 4
    cost = pl.CostEstimate(
        flops=2 * n_pad * (2 * emb_dim) * h_pad + 2 * n_pad * h_pad * h_pad,
        transcendentals=2 * n_pad * h_pad,
        bytes_accessed=bytes_acts + bytes_weights + bytes_out,
    )

    out = pl.pallas_call(
        item_tower_kernel,
        out_shape=jax.ShapeDtypeStruct((n_pad, h_pad), jnp.float32),
        grid=grid,
        in_specs=[
            pl.BlockSpec((tm, emb_dim), lambda i: (i, 0)),      # item rows
            pl.BlockSpec((tm, emb_dim), lambda i: (i, 0)),      # cat rows
            pl.BlockSpec((emb_dim, h_pad), lambda i: (0, 0)),   # w1 (item half)
            pl.BlockSpec((emb_dim, h_pad), lambda i: (0, 0)),   # w1 (cat half)
            pl.BlockSpec((1, h_pad), lambda i: (0, 0)),         # b1
            pl.BlockSpec((h_pad, h_pad), lambda i: (0, 0)),     # w2
            pl.BlockSpec((1, h_pad), lambda i: (0, 0)),         # b2
        ],
        out_specs=pl.BlockSpec((tm, h_pad), lambda i: (i, 0)),
        compiler_params=pltpu.CompilerParams(
            dimension_semantics=("parallel",)),
        cost_estimate=cost,
    )(item_emb, cat_emb, w1_item, w1_cat, b1, w2, b2)

    return out[:n, :hidden_dim].reshape(batch_size, seq_len, hidden_dim)


def init_params(key, embedding_dim, hidden_dim, vocab_size):
    """Deterministic synthetic parameters (shapes match the torch module)."""
    k1, k2, k3, k4, k5, k6 = jax.random.split(key, 6)
    in1 = 2 * embedding_dim
    return {
        # nn.Embedding(vocab_size, embedding_dim) x2
        "item_emb": jax.random.normal(k1, (vocab_size, embedding_dim), jnp.float32),
        "cat_emb": jax.random.normal(k2, (vocab_size, embedding_dim), jnp.float32),
        # nn.Linear(2*E, H): stored as (in, out) = weight.T, bias (1, H)
        "w1": jax.random.uniform(k3, (in1, hidden_dim), jnp.float32,
                                 -1.0 / jnp.sqrt(in1), 1.0 / jnp.sqrt(in1)),
        "b1": jax.random.uniform(k4, (1, hidden_dim), jnp.float32,
                                 -1.0 / jnp.sqrt(in1), 1.0 / jnp.sqrt(in1)),
        # nn.Linear(H, H)
        "w2": jax.random.uniform(k5, (hidden_dim, hidden_dim), jnp.float32,
                                 -1.0 / jnp.sqrt(hidden_dim), 1.0 / jnp.sqrt(hidden_dim)),
        "b2": jax.random.uniform(k6, (1, hidden_dim), jnp.float32,
                                 -1.0 / jnp.sqrt(hidden_dim), 1.0 / jnp.sqrt(hidden_dim)),
    }


if __name__ == "__main__":
    embedding_dim = 16
    hidden_dim = 32
    vocab_size = 50
    batch, seq = 2, 8

    key = jax.random.PRNGKey(0)
    kp, ki, kc = jax.random.split(key, 3)

    params = init_params(kp, embedding_dim, hidden_dim, vocab_size)
    item_ids = jax.random.randint(ki, (batch, seq), 0, vocab_size, dtype=jnp.int32)
    category_ids = jax.random.randint(kc, (batch, seq), 0, vocab_size, dtype=jnp.int32)

    # f32 path (exact) and bf16 path (fast MXU inputs, f32 accumulation).
    out_f32 = jax.block_until_ready(
        item_tower_forward(item_ids, category_ids, params, use_bf16=False))
    out_bf16 = jax.block_until_ready(
        item_tower_forward(item_ids, category_ids, params, use_bf16=True))

    # pure-JAX f32 reference of the module's math
    item_emb = jnp.take(params["item_emb"], item_ids.reshape(-1), axis=0)
    cat_emb = jnp.take(params["cat_emb"], category_ids.reshape(-1), axis=0)
    comb = jnp.concatenate([item_emb, cat_emb], axis=-1)
    ref = jnp.tanh(comb @ params["w1"] + params["b1"])
    ref = jnp.tanh(ref @ params["w2"] + params["b2"]).reshape(batch, seq, hidden_dim)

    assert out_f32.shape == (batch, seq, hidden_dim)
    assert out_bf16.shape == (batch, seq, hidden_dim)
    assert jnp.allclose(out_f32, ref, atol=1e-4, rtol=1e-4)
    # bf16 MXU inputs: tolerance loosened (outputs are tanh-bounded in [-1, 1])
    assert jnp.allclose(out_bf16, ref, atol=3e-2)

    print("KERNEL_OK")
</pallas_src>

<mosaic_0001>
module attributes {stable_mosaic.version = 11 : i64} {
  func.func @item_tower_kernel(%arg0: i32, %arg1: memref<16x16xf32, #tpu.memory_space<vmem>>, %arg2: memref<16x16xf32, #tpu.memory_space<vmem>>, %arg3: memref<16x128xf32, #tpu.memory_space<vmem>>, %arg4: memref<16x128xf32, #tpu.memory_space<vmem>>, %arg5: memref<1x128xf32, #tpu.memory_space<vmem>>, %arg6: memref<128x128xf32, #tpu.memory_space<vmem>>, %arg7: memref<1x128xf32, #tpu.memory_space<vmem>>, %arg8: memref<16x128xf32, #tpu.memory_space<vmem>>) attributes {dimension_semantics = [#tpu.dimension_semantics<parallel>], iteration_bounds = array<i64: 1>, scalar_prefetch = 0 : i64, scratch_operands = 0 : i64, tpu.core_type = #tpu.core_type<tc>, window_params = [{transform_indices = @transform_0, window_bounds = array<i64: 16, 16>}, {transform_indices = @transform_1, window_bounds = array<i64: 16, 16>}, {pipeline_mode = #tpu.pipeline_mode<synchronous>, transform_indices = @transform_2, window_bounds = array<i64: 16, 128>}, {pipeline_mode = #tpu.pipeline_mode<synchronous>, transform_indices = @transform_3, window_bounds = array<i64: 16, 128>}, {pipeline_mode = #tpu.pipeline_mode<synchronous>, transform_indices = @transform_4, window_bounds = array<i64: 1, 128>}, {pipeline_mode = #tpu.pipeline_mode<synchronous>, transform_indices = @transform_5, window_bounds = array<i64: 128, 128>}, {pipeline_mode = #tpu.pipeline_mode<synchronous>, transform_indices = @transform_6, window_bounds = array<i64: 1, 128>}, {transform_indices = @transform_7, window_bounds = array<i64: 16, 128>}]} {
    %c0 = arith.constant 0 : index
    %c0_0 = arith.constant 0 : index
    %0 = vector.load %arg1[%c0, %c0_0] : memref<16x16xf32, #tpu.memory_space<vmem>>, vector<16x16xf32>
    %c0_1 = arith.constant 0 : index
    %c0_2 = arith.constant 0 : index
    %1 = vector.load %arg3[%c0_1, %c0_2] : memref<16x128xf32, #tpu.memory_space<vmem>>, vector<16x128xf32>
    %cst = arith.constant dense<0.000000e+00> : vector<16x128xf32>
    %2 = tpu.matmul %0, %1, %cst {dimension_numbers = #tpu.dot_dimension_numbers<[1], [0], [0], [1], [0, 0, 1, 1], [], []>} : vector<16x16xf32>, vector<16x128xf32>, vector<16x128xf32> -> vector<16x128xf32>
    %c0_3 = arith.constant 0 : index
    %c0_4 = arith.constant 0 : index
    %3 = vector.load %arg2[%c0_3, %c0_4] : memref<16x16xf32, #tpu.memory_space<vmem>>, vector<16x16xf32>
    %c0_5 = arith.constant 0 : index
    %c0_6 = arith.constant 0 : index
    %4 = vector.load %arg4[%c0_5, %c0_6] : memref<16x128xf32, #tpu.memory_space<vmem>>, vector<16x128xf32>
    %cst_7 = arith.constant dense<0.000000e+00> : vector<16x128xf32>
    %5 = tpu.matmul %3, %4, %cst_7 {dimension_numbers = #tpu.dot_dimension_numbers<[1], [0], [0], [1], [0, 0, 1, 1], [], []>} : vector<16x16xf32>, vector<16x128xf32>, vector<16x128xf32> -> vector<16x128xf32>
    %6 = arith.addf %2, %5 : vector<16x128xf32>
    %c0_8 = arith.constant 0 : index
    %c0_9 = arith.constant 0 : index
    %7 = vector.load %arg5[%c0_8, %c0_9] : memref<1x128xf32, #tpu.memory_space<vmem>>, vector<1x128xf32>
    %8 = vector.broadcast %7 : vector<1x128xf32> to vector<16x128xf32>
    %9 = arith.addf %6, %8 : vector<16x128xf32>
    %10 = math.tanh %9 : vector<16x128xf32>
    %c0_10 = arith.constant 0 : index
    %c0_11 = arith.constant 0 : index
    %11 = vector.load %arg6[%c0_10, %c0_11] : memref<128x128xf32, #tpu.memory_space<vmem>>, vector<128x128xf32>
    %cst_12 = arith.constant dense<0.000000e+00> : vector<16x128xf32>
    %12 = tpu.matmul %10, %11, %cst_12 {dimension_numbers = #tpu.dot_dimension_numbers<[1], [0], [0], [1], [0, 0, 1, 1], [], []>} : vector<16x128xf32>, vector<128x128xf32>, vector<16x128xf32> -> vector<16x128xf32>
    %c0_13 = arith.constant 0 : index
    %c0_14 = arith.constant 0 : index
    %13 = vector.load %arg7[%c0_13, %c0_14] : memref<1x128xf32, #tpu.memory_space<vmem>>, vector<1x128xf32>
    %14 = vector.broadcast %13 : vector<1x128xf32> to vector<16x128xf32>
    %15 = arith.addf %12, %14 : vector<16x128xf32>
    %16 = math.tanh %15 : vector<16x128xf32>
    %c0_15 = arith.constant 0 : index
    %c0_16 = arith.constant 0 : index
    %17 = vector.load %arg8[%c0_15, %c0_16] : memref<16x128xf32, #tpu.memory_space<vmem>>, vector<16x128xf32>
    tpu.vector_store %arg8[%c0_15, %c0_16], %16 {strides = array<i32>} : memref<16x128xf32, #tpu.memory_space<vmem>>, vector<16x128xf32>,
    return
  }
  func.func @transform_0(%arg0: i32) -> (i32, i32) {
    %c0_i32 = arith.constant 0 : i32
    %c0_i32_0 = arith.constant 0 : i32
    return %arg0, %c0_i32 : i32, i32
  }
  func.func @transform_1(%arg0: i32) -> (i32, i32) {
    %c0_i32 = arith.constant 0 : i32
    %c0_i32_0 = arith.constant 0 : i32
    return %arg0, %c0_i32 : i32, i32
  }
  func.func @transform_2(%arg0: i32) -> (i32, i32) {
    %c0_i32 = arith.constant 0 : i32
    %c0_i32_0 = arith.constant 0 : i32
    %c0_i32_1 = arith.constant 0 : i32
    return %c0_i32, %c0_i32_0 : i32, i32
  }
  func.func @transform_3(%arg0: i32) -> (i32, i32) {
    %c0_i32 = arith.constant 0 : i32
    %c0_i32_0 = arith.constant 0 : i32
    %c0_i32_1 = arith.constant 0 : i32
    return %c0_i32, %c0_i32_0 : i32, i32
  }
  func.func @transform_4(%arg0: i32) -> (i32, i32) {
    %c0_i32 = arith.constant 0 : i32
    %c0_i32_0 = arith.constant 0 : i32
    %c0_i32_1 = arith.constant 0 : i32
    return %c0_i32, %c0_i32_0 : i32, i32
  }
  func.func @transform_5(%arg0: i32) -> (i32, i32) {
    %c0_i32 = arith.constant 0 : i32
    %c0_i32_0 = arith.constant 0 : i32
    %c0_i32_1 = arith.constant 0 : i32
    return %c0_i32, %c0_i32_0 : i32, i32
  }
  func.func @transform_6(%arg0: i32) -> (i32, i32) {
    %c0_i32 = arith.constant 0 : i32
    %c0_i32_0 = arith.constant 0 : i32
    %c0_i32_1 = arith.constant 0 : i32
    return %c0_i32, %c0_i32_0 : i32, i32
  }
  func.func @transform_7(%arg0: i32) -> (i32, i32) {
    %c0_i32 = arith.constant 0 : i32
    %c0_i32_0 = arith.constant 0 : i32
    return %arg0, %c0_i32 : i32, i32
  }
}

</mosaic_0001>

<bundles_post_ra>
// kernel: tpu_custom_call.1
= control target key start
LH: loop header
LB: loop body
LE: loop exit
PB: predicated region body
PF: predicated region fallthrough
CT: control target
= control target key end

     0   :  { %12 = vsyncpa [#allocation3], 0  ;;  %s532_s0 = inlined_call_operand.hbm [shape: f32[16,16], index: 0, kind: input, shape index: {}]   ;;  %s533_s1 = inlined_call_operand.hbm [shape: f32[16,16], index: 1, kind: input, shape index: {}]   ;;  %s534_s2 = inlined_call_operand.hbm [shape: f32[16,128], index: 2, kind: input, shape index: {}]   ;;  %s535_s3 = inlined_call_operand.hbm [shape: f32[16,128], index: 3, kind: input, shape index: {}]   ;;  %s536_s4 = inlined_call_operand.vmem [shape: f32[1,128], index: 4, kind: input, shape index: {}]   ;;  %s537_s5 = inlined_call_operand.hbm [shape: f32[128,128], index: 5, kind: input, shape index: {}]   ;;  %s538_s6 = inlined_call_operand.vmem [shape: f32[1,128], index: 6, kind: input, shape index: {}]   ;;  %s539_s7 = inlined_call_operand.hbm [shape: f32[16,128], index: 7, kind: output, shape index: {}]  }
   0x1   :  { %13 = vsyncpa [#allocation6], 0 }
   0x2   :  { %14 = vsyncpa [#allocation9], 0 }
   0x3   :  { %15 = vsyncpa [#allocation4], 0  ;;  %s33_s26 = sshll.u32 %s533_s1, 4  ;;  %s438_s27 = smov [#allocation5]   ;;  %s34_s26 = int_to_ptr.hbm [resolvable:$true] %s33_s26 }
   0x4   :  { %s35_s28 = sshll.u32 %s438_s27, 4  ;;  %s59_s8 = sshll.u32 %s535_s3, 4  ;;  %s36_s28 = int_to_ptr.vmem [resolvable:$true] %s35_s28  ;;  %s60_s8 = int_to_ptr.hbm [resolvable:$true] %s59_s8 }
   0x5   :  { %s439_s9 = smov 128   ;;  %s440_s10 = smov 8  }
   0x6   :  { %41 = dma.hbm_to_vmem [thread:$0]  %s34_s26, 256, %s36_s28, [#allocation6], %s439_s9, %s439_s9, %s440_s10  }
   0x7   :  { %s441_s11 = smov [#allocation8]   ;;  %s20_s1 = sshll.u32 %s532_s0, 4  ;;  %s21_s1 = int_to_ptr.hbm [resolvable:$true] %s20_s1 }
   0x8   :  { %s61_s12 = sshll.u32 %s441_s11, 4  ;;  %s46_s16 = sshll.u32 %s534_s2, 4  ;;  %s62_s12 = int_to_ptr.vmem [resolvable:$true] %s61_s12  ;;  %s47_s16 = int_to_ptr.hbm [resolvable:$true] %s46_s16 }
   0x9   :  { %67 = dma.hbm_to_vmem [thread:$0]  %s60_s8, 256, %s62_s12, [#allocation9], %s439_s9, %s439_s9, %s440_s10  }
   0xa   :  { %s442_s17 = smov [#allocation2]   ;;  %s443_s19 = smov [#allocation7]  }
   0xb   :  { %s22_s18 = sshll.u32 %s442_s17, 4  ;;  %s48_s0 = sshll.u32 %s443_s19, 4  ;;  %s23_s18 = int_to_ptr.vmem [resolvable:$true] %s22_s18  ;;  %s49_s0 = int_to_ptr.vmem [resolvable:$true] %s48_s0 }
   0xc   :  { %28 = dma.hbm_to_vmem [thread:$0]  %s21_s1, 256, %s23_s18, [#allocation3], %s439_s9, %s439_s9, %s440_s10  }
   0xd   :  { %s74_s22 = sshll.u32 %s537_s5, 4  ;;  %s444_s2 = smov [#allocation10]   ;;  %s75_s22 = int_to_ptr.hbm [resolvable:$true] %s74_s22 }
   0xe   :  { %54 = dma.hbm_to_vmem [thread:$0]  %s47_s16, 256, %s49_s0, [#allocation6], %s439_s9, %s439_s9, %s440_s10  }
   0xf   :  { %s76_s23 = sshll.u32 %s444_s2, 4  ;;  %s77_s23 = int_to_ptr.vmem [resolvable:$true] %s76_s23 }
  0x10   :  { %82 = dma.hbm_to_vmem [thread:$0]  %s75_s22, 2048, %s77_s23, [#allocation9], %s439_s9, %s439_s9, %s440_s10  }
  0x11   :  { %430 = dma.done.wait [#allocation3], 256  }
  0x12   :  { %431 = vsyncadd [#allocation3], 4294967040 }
  0x13   :  { %432 = dma.done.wait [#allocation6], 512  }
  0x14   :  { %433 = vsyncadd [#allocation6], 4294966784 }
  0x15   :  { %434 = dma.done.wait [#allocation9], 2304  }
  0x16   :  { %435 = vsyncadd [#allocation9], 4294964992  ;;  %v112_v0 = vld [vmem:[#allocation8 + $0x8] sm:$0xff]  ;;  %v108_v1 = vld [vmem:[#allocation7 + $0x8] sm:$0xff]  ;;  %vm113_vm0 = vcmask 130048   ;;  %s233_s30 = sshll.u32 %s539_s7, 4  ;;  %s234_s30 = int_to_ptr.hbm [resolvable:$true] %s233_s30 }
  0x17   :  { %v111_v2 = vld [vmem:[#allocation8] sm:$0xff]  ;;  %134 = vmatpush.msra.mxu0 %v112_v0  ;;  %163 = vmatpush.msra.mxu1 %v108_v1  ;;  %v107_v3 = vld [vmem:[#allocation7] sm:$0xff]  ;;  %v195_v6 = vld [vmem:[#allocation10 + $0x78] sm:$0xff] }
  0x18   :  { %v109_v4 = vld [vmem:[#allocation5] sm:$0xff]  ;;  %v105_v5 = vld [vmem:[#allocation2] sm:$0xff]  ;;  %200 = vmatpush.msra.mxu2 %v195_v6  ;;  %252 = vmatpush.msra.mxu3 %v195_v6  ;;  %v193_v8 = vld [vmem:[#allocation10 + $0x68] sm:$0xff] }
  0x19   :  { %135 = vmatpush.msra.mxu0 %v111_v2  ;;  %164 = vmatpush.msra.mxu1 %v107_v3  ;;  %v194_v7 = vld [vmem:[#allocation10 + $0x70] sm:$0xff]  ;;  %v192_v9 = vld [vmem:[#allocation10 + $0x60] sm:$0xff]  ;;  %v110_v10 = vld [vmem:[#allocation5 + $0x8] sm:$0xff] }
  0x1a   :  { %248 = vmatmul.msk.f32.vlgmr.msra.gmra.mxu0 %vm113_vm0, %v109_v4  ;;  %250 = vmatmul.msk.f32.vlgmr.msra.gmra.mxu1 %vm113_vm0, %v105_v5  ;;  %v106_v11 = vld [vmem:[#allocation2 + $0x8] sm:$0xff]  ;;  %v191_v12 = vld [vmem:[#allocation10 + $0x58] sm:$0xff]  ;;  %v190_v13 = vld [vmem:[#allocation10 + $0x50] sm:$0xff] }
  0x1b   :  { %201 = vmatpush.msra.mxu2 %v194_v7  ;;  %253 = vmatpush.msra.mxu3 %v194_v7  ;;  %v189_v14 = vld [vmem:[#allocation10 + $0x48] sm:$0xff]  ;;  %v188_v15 = vld [vmem:[#allocation10 + $0x40] sm:$0xff]  ;;  %v187_v16 = vld [vmem:[#allocation10 + $0x38] sm:$0xff] }
  0x1c   :  { %v186_v17 = vld [vmem:[#allocation10 + $0x30] sm:$0xff]  ;;  %v185_v18 = vld [vmem:[#allocation10 + $0x28] sm:$0xff]  ;;  %v184_v19 = vld [vmem:[#allocation10 + $0x20] sm:$0xff] }
  0x1d   :  { %202 = vmatpush.msra.mxu2 %v193_v8  ;;  %254 = vmatpush.msra.mxu3 %v193_v8  ;;  %v183_v20 = vld [vmem:[#allocation10 + $0x18] sm:$0xff]  ;;  %v182_v21 = vld [vmem:[#allocation10 + $0x10] sm:$0xff]  ;;  %v181_v22 = vld [vmem:[#allocation10 + $0x8] sm:$0xff] }
  0x1e   :  { %v180_v23 = vld [vmem:[#allocation10] sm:$0xff] }
  0x1f   :  { %203 = vmatpush.msra.mxu2 %v192_v9  ;;  %255 = vmatpush.msra.mxu3 %v192_v9  ;;  %v276_v24 = vld [vmem:[%s536_s4] ss:$0 sm:$0xff]  ;;  %s445_s4 = smov [#allocation11]  }
  0x20   :  { %v277_v35 = vld [vmem:[%s538_s6] ss:$0 sm:$0xff]  ;;  %s231_s27 = sshll.u32 %s445_s4, 4  ;;  %s232_s27 = int_to_ptr.vmem [resolvable:$true] %s231_s27 }
  0x21   :  { %204 = vmatpush.msra.mxu2 %v191_v12  ;;  %256 = vmatpush.msra.mxu3 %v191_v12 }
  0x22   :  { %249 = vmatmul.msk.f32.gmra.mxu0 %vm113_vm0, %v110_v10  ;;  %251 = vmatmul.msk.f32.gmra.mxu1 %vm113_vm0, %v106_v11 }
  0x23   :  { %205 = vmatpush.msra.mxu2 %v190_v13  ;;  %257 = vmatpush.msra.mxu3 %v190_v13 }
  0x25   :  { %206 = vmatpush.msra.mxu2 %v189_v14  ;;  %258 = vmatpush.msra.mxu3 %v189_v14 }
  0x27   :  { %207 = vmatpush.msra.mxu2 %v188_v15  ;;  %259 = vmatpush.msra.mxu3 %v188_v15 }
  0x29   :  { %208 = vmatpush.msra.mxu2 %v187_v16  ;;  %260 = vmatpush.msra.mxu3 %v187_v16 }
  0x2b   :  { %209 = vmatpush.msra.mxu2 %v186_v17  ;;  %261 = vmatpush.msra.mxu3 %v186_v17 }
  0x2d   :  { %210 = vmatpush.msra.mxu2 %v185_v18  ;;  %262 = vmatpush.msra.mxu3 %v185_v18 }
  0x2f   :  { %211 = vmatpush.msra.mxu2 %v184_v19  ;;  %263 = vmatpush.msra.mxu3 %v184_v19 }
  0x31   :  { %212 = vmatpush.msra.mxu2 %v183_v20  ;;  %264 = vmatpush.msra.mxu3 %v183_v20 }
  0x33   :  { %213 = vmatpush.msra.mxu2 %v182_v21  ;;  %265 = vmatpush.msra.mxu3 %v182_v21 }
  0x35   :  { %214 = vmatpush.msra.mxu2 %v181_v22  ;;  %266 = vmatpush.msra.mxu3 %v181_v22 }
  0x37   :  { %215 = vmatpush.msra.mxu2 %v180_v23  ;;  %267 = vmatpush.msra.mxu3 %v180_v23 }
  0x97   :  { %v137_v25 = vpop.f32.mrf.mxu0  ;;  %v166_v26 = vpop.f32.mrf.mxu1 }
  0x98   :  { %v167_v27 = vadd.f32 %v166_v26, %v137_v25 }
  0x9a   :  { %v176_v28 = vadd.f32 %v276_v24, %v167_v27 }
  0x9c   :  { %278 = vtanh.f32 %v176_v28 }
  0x9f   :  { %v140_v29 = vpop.f32.mrf.mxu0  ;;  %v169_v30 = vpop.f32.mrf.mxu1 }
  0xa0   :  { %v170_v31 = vadd.f32 %v169_v30, %v140_v29 }
  0xa2   :  { %v279_v32 = vpop.eup %278  ;;  %v177_v33 = vadd.f32 %v276_v24, %v170_v31 }
  0xa3   :  { %216 = vmatmul.f32.vlgmr.msra.gmra.mxu2 %v279_v32 }
  0xa4   :  { %280 = vtanh.f32 %v177_v33 }
  0xaa   :  { %v281_v34 = vpop.eup %280 }
  0xab   :  { %219 = vmatmul.f32.vlgmr.msra.gmra.mxu3 %v281_v34 }
 0x126   :  { %v217_v36 = vpop.f32.mrf.mxu2 }
 0x127   :  { %v218_v37 = vadd.f32 %v277_v35, %v217_v36 }
 0x129   :  { %282 = vtanh.f32 %v218_v37 }
 0x12e   :  { %v220_v38 = vpop.f32.mrf.mxu3 }
 0x12f   :  { %v283_v39 = vpop.eup %282  ;;  %v221_v40 = vadd.f32 %v277_v35, %v220_v38 }
 0x130   :  { %225 = vst [vmem:[#allocation11] sm:$0xff] %v283_v39 }
 0x131   :  { %284 = vtanh.f32 %v221_v40 }
 0x137   :  { %v285_v41 = vpop.eup %284 }
 0x138   :  { %226 = vst [vmem:[#allocation11 + $0x8] sm:$0xff] %v285_v41 }
 0x139   :  { %239 = dma.vmem_to_hbm [thread:$0]  %s232_s27, 256, %s234_s30, [#allocation4], %s439_s9, %s439_s9, %s440_s10  }
 0x13a   :  { %436 = dma.done.wait [#allocation4], 256  }
 0x13b   :  { %437 = vsyncadd [#allocation4], 4294967040 }
 0x13c   :  { %244 = vsyncpa [#allocation3], 1 }
 0x13d   :  { %245 = vsyncpa [#allocation6], 1 }
 0x13e   :  { %246 = vsyncpa [#allocation9], 1 }
 0x13f   :  { %247 = vsyncpa [#allocation4], 1 }

</bundles_post_ra>
